<compile_context>
chip_gen: v5e
topology: v5e:2x2
jax: 0.10.0
libtpu: 0.0.40
codegen_flags: <defaults>
</compile_context>

<pallas_src>
import functools

import jax
import jax.numpy as jnp
from jax.experimental import pallas as pl
from jax.experimental.pallas import tpu as pltpu


def _round_up(x, m):
    return ((x + m - 1) // m) * m


def _cdiv(a, b):
    return (a + b - 1) // b


def _mlp_kernel(xT_ref,
                w1_ref, b1_ref,
                w2_ref, b2_ref,
                w3_ref, b3_ref,
                w4_ref, b4_ref,
                o_ref):
    """One feature-major (10, TILE_B) batch tile through the 4-layer MLP.

    Activations stay transposed, (features, TILE_B), so every load, VPU op
    and the final store is lane-dense, and no per-tile XLU transpose of the
    big x operand is needed (layer 1 is a plain W @ x_T MXU matmul).
    """
    xT = xT_ref[...]                                            # (10, TILE_B)

    # Layer 1: (32, TILE_B) = W1 (32,10) @ x^T
    h = jnp.dot(w1_ref[...], xT, preferred_element_type=jnp.float32)
    h = jnp.maximum(h + b1_ref[...], 0.0)

    # Layer 2: (16, TILE_B) = W2 (16,32) @ h
    h = jnp.dot(w2_ref[...], h, preferred_element_type=jnp.float32)
    h = jnp.maximum(h + b2_ref[...], 0.0)

    # Layer 3: (8, TILE_B) = W3 (8,16) @ h
    h = jnp.dot(w3_ref[...], h, preferred_element_type=jnp.float32)
    h = jnp.maximum(h + b3_ref[...], 0.0)

    # Layer 4 + sigmoid: (1, TILE_B) = W4 (1,8) @ h.
    # sigmoid(z) = 0.5*(tanh(z/2)+1): one EUP transcendental, no VALU divide.
    z = jnp.dot(w4_ref[...], h, preferred_element_type=jnp.float32) + b4_ref[...]
    o_ref[...] = (0.5 * (jnp.tanh(0.5 * z) + 1.0)).astype(o_ref.dtype)


def _choose_tile(batch, requested):
    """Pick a lane-aligned (multiple-of-128) batch tile.

    Big default (8192 rows) amortizes the ~0.35 us per-grid-step overhead; for
    mid-size batches the tile is capped at half the (128-aligned) batch so the
    'parallel' grid axis has >= 2 steps and both v7x TensorCores stay busy.
    """
    batch_ru = _round_up(max(batch, 1), 128)
    cap = _round_up(_cdiv(batch_ru, 2), 128) if batch_ru >= 256 else batch_ru
    return max(128, min(_round_up(requested, 128), cap))


@functools.partial(jax.jit, static_argnames=("tile_b",))
def red_neuronal_forward(x, params, *, tile_b=8192):
    """Batch-tiled, pipelined Pallas launch of the 4-layer MLP.

    x: (batch, 10) float32 (PyTorch layout). Internally the batch is streamed
    feature-major, (10, batch), so every per-tile x DMA is lane-dense.
    """
    (w1, b1), (w2, b2), (w3, b3), (w4, b4) = params
    batch, in_features = x.shape
    assert in_features == 10, in_features

    tile_b = _choose_tile(batch, tile_b)
    padded = _round_up(batch, tile_b)
    num_tiles = padded // tile_b

    # One extra HBM pass to present x feature-major; removes the per-tile XLU
    # transpose and the lane-sparse (TILE_B, 10) input DMA.
    xT = x.T
    if padded != batch:
        xT = jnp.pad(xT, ((0, 0), (0, padded - batch)))

    def param_spec(a):
        # Whole-array block with a constant index_map: fetched once, then
        # VMEM-resident across all batch tiles (~5 KB total).
        return pl.BlockSpec(a.shape, lambda i: (0, 0))

    out = pl.pallas_call(
        _mlp_kernel,
        out_shape=jax.ShapeDtypeStruct((1, padded), jnp.float32),
        grid=(num_tiles,),
        in_specs=[
            pl.BlockSpec((10, tile_b), lambda i: (0, i)),       # x^T streamed/tiled
            param_spec(w1), param_spec(b1),
            param_spec(w2), param_spec(b2),
            param_spec(w3), param_spec(b3),
            param_spec(w4), param_spec(b4),
        ],
        out_specs=pl.BlockSpec((1, tile_b), lambda i: (0, i)),  # lane-dense store
        compiler_params=pltpu.CompilerParams(
            dimension_semantics=("parallel",),                  # megacore on v7x
        ),
    )(xT, w1, b1, w2, b2, w3, b3, w4, b4)

    # (1, padded) row-major == batch order; reshape is free, then strip padding.
    return out.reshape(padded, 1)[:batch]


def init_params(key):
    """Parameter init mimicking nn.Linear's U(-1/sqrt(fan_in), +), PyTorch layout."""
    dims = [(10, 32), (32, 16), (16, 8), (8, 1)]
    params = []
    for fan_in, fan_out in dims:
        key, kw, kb = jax.random.split(key, 3)
        bound = 1.0 / jnp.sqrt(jnp.float32(fan_in))
        w = jax.random.uniform(kw, (fan_out, fan_in), jnp.float32, -bound, bound)
        b = jax.random.uniform(kb, (fan_out, 1), jnp.float32, -bound, bound)
        params.append((w, b))
    return params


def reference_forward(x, params):
    """Pure-JAX reference for sanity checking."""
    (w1, b1), (w2, b2), (w3, b3), (w4, b4) = params
    h = jax.nn.relu(x @ w1.T + b1.T)
    h = jax.nn.relu(h @ w2.T + b2.T)
    h = jax.nn.relu(h @ w3.T + b3.T)
    return jax.nn.sigmoid(h @ w4.T + b4.T)


if __name__ == "__main__":
    key = jax.random.PRNGKey(0)
    key, kx = jax.random.split(key)
    params = init_params(key)

    # Small primary example (single 128-row tile after padding).
    batch = 8
    x = jax.random.normal(kx, (batch, 10), dtype=jnp.float32)
    out = jax.block_until_ready(red_neuronal_forward(x, params))
    ref = reference_forward(x, params)
    assert out.shape == (batch, 1), out.shape
    assert jnp.allclose(out, ref, atol=2e-5, rtol=2e-5), "mismatch vs reference"

    # Second example exercising >= 2 grid steps + padded-tail handling.
    key, kx2 = jax.random.split(key)
    batch2 = 300
    x2 = jax.random.normal(kx2, (batch2, 10), dtype=jnp.float32)
    out2 = jax.block_until_ready(red_neuronal_forward(x2, params))
    ref2 = reference_forward(x2, params)
    assert out2.shape == (batch2, 1), out2.shape
    assert jnp.allclose(out2, ref2, atol=2e-5, rtol=2e-5), "mismatch vs reference (tiled)"

    print("KERNEL_OK")
</pallas_src>

<mosaic_0001>
module attributes {stable_mosaic.version = 11 : i64} {
  func.func @_mlp_kernel(%arg0: i32, %arg1: memref<10x128xf32, #tpu.memory_space<vmem>>, %arg2: memref<32x10xf32, #tpu.memory_space<vmem>>, %arg3: memref<32x1xf32, #tpu.memory_space<vmem>>, %arg4: memref<16x32xf32, #tpu.memory_space<vmem>>, %arg5: memref<16x1xf32, #tpu.memory_space<vmem>>, %arg6: memref<8x16xf32, #tpu.memory_space<vmem>>, %arg7: memref<8x1xf32, #tpu.memory_space<vmem>>, %arg8: memref<1x8xf32, #tpu.memory_space<vmem>>, %arg9: memref<1x1xf32, #tpu.memory_space<vmem>>, %arg10: memref<1x128xf32, #tpu.memory_space<vmem>>) attributes {dimension_semantics = [#tpu.dimension_semantics<parallel>], iteration_bounds = array<i64: 1>, scalar_prefetch = 0 : i64, scratch_operands = 0 : i64, tpu.core_type = #tpu.core_type<tc>, window_params = [{transform_indices = @transform_0, window_bounds = array<i64: 10, 128>}, {pipeline_mode = #tpu.pipeline_mode<synchronous>, transform_indices = @transform_1, window_bounds = array<i64: 32, 10>}, {pipeline_mode = #tpu.pipeline_mode<synchronous>, transform_indices = @transform_2, window_bounds = array<i64: 32, 1>}, {pipeline_mode = #tpu.pipeline_mode<synchronous>, transform_indices = @transform_3, window_bounds = array<i64: 16, 32>}, {pipeline_mode = #tpu.pipeline_mode<synchronous>, transform_indices = @transform_4, window_bounds = array<i64: 16, 1>}, {pipeline_mode = #tpu.pipeline_mode<synchronous>, transform_indices = @transform_5, window_bounds = array<i64: 8, 16>}, {pipeline_mode = #tpu.pipeline_mode<synchronous>, transform_indices = @transform_6, window_bounds = array<i64: 8, 1>}, {pipeline_mode = #tpu.pipeline_mode<synchronous>, transform_indices = @transform_7, window_bounds = array<i64: 1, 8>}, {pipeline_mode = #tpu.pipeline_mode<synchronous>, transform_indices = @transform_8, window_bounds = array<i64: 1, 1>}, {transform_indices = @transform_9, window_bounds = array<i64: 1, 128>}]} {
    %c0 = arith.constant 0 : index
    %c0_0 = arith.constant 0 : index
    %0 = vector.load %arg1[%c0, %c0_0] : memref<10x128xf32, #tpu.memory_space<vmem>>, vector<10x128xf32>
    %c0_1 = arith.constant 0 : index
    %c0_2 = arith.constant 0 : index
    %1 = vector.load %arg2[%c0_1, %c0_2] : memref<32x10xf32, #tpu.memory_space<vmem>>, vector<32x10xf32>
    %cst = arith.constant dense<0.000000e+00> : vector<32x128xf32>
    %2 = tpu.matmul %1, %0, %cst {dimension_numbers = #tpu.dot_dimension_numbers<[1], [0], [0], [1], [0, 0, 1, 1], [], []>} : vector<32x10xf32>, vector<10x128xf32>, vector<32x128xf32> -> vector<32x128xf32>
    %c0_3 = arith.constant 0 : index
    %c0_4 = arith.constant 0 : index
    %3 = vector.load %arg3[%c0_3, %c0_4] : memref<32x1xf32, #tpu.memory_space<vmem>>, vector<32x1xf32>
    %4 = vector.broadcast %3 : vector<32x1xf32> to vector<32x128xf32>
    %5 = arith.addf %2, %4 : vector<32x128xf32>
    %cst_5 = arith.constant 0.000000e+00 : f32
    %6 = vector.broadcast %cst_5 : f32 to vector<32x128xf32>
    %7 = arith.maximumf %5, %6 : vector<32x128xf32>
    %c0_6 = arith.constant 0 : index
    %c0_7 = arith.constant 0 : index
    %8 = vector.load %arg4[%c0_6, %c0_7] : memref<16x32xf32, #tpu.memory_space<vmem>>, vector<16x32xf32>
    %cst_8 = arith.constant dense<0.000000e+00> : vector<16x128xf32>
    %9 = tpu.matmul %8, %7, %cst_8 {dimension_numbers = #tpu.dot_dimension_numbers<[1], [0], [0], [1], [0, 0, 1, 1], [], []>} : vector<16x32xf32>, vector<32x128xf32>, vector<16x128xf32> -> vector<16x128xf32>
    %c0_9 = arith.constant 0 : index
    %c0_10 = arith.constant 0 : index
    %10 = vector.load %arg5[%c0_9, %c0_10] : memref<16x1xf32, #tpu.memory_space<vmem>>, vector<16x1xf32>
    %11 = vector.broadcast %10 : vector<16x1xf32> to vector<16x128xf32>
    %12 = arith.addf %9, %11 : vector<16x128xf32>
    %cst_11 = arith.constant 0.000000e+00 : f32
    %13 = vector.broadcast %cst_11 : f32 to vector<16x128xf32>
    %14 = arith.maximumf %12, %13 : vector<16x128xf32>
    %c0_12 = arith.constant 0 : index
    %c0_13 = arith.constant 0 : index
    %15 = vector.load %arg6[%c0_12, %c0_13] : memref<8x16xf32, #tpu.memory_space<vmem>>, vector<8x16xf32>
    %cst_14 = arith.constant dense<0.000000e+00> : vector<8x128xf32>
    %16 = tpu.matmul %15, %14, %cst_14 {dimension_numbers = #tpu.dot_dimension_numbers<[1], [0], [0], [1], [0, 0, 1, 1], [], []>} : vector<8x16xf32>, vector<16x128xf32>, vector<8x128xf32> -> vector<8x128xf32>
    %c0_15 = arith.constant 0 : index
    %c0_16 = arith.constant 0 : index
    %17 = vector.load %arg7[%c0_15, %c0_16] : memref<8x1xf32, #tpu.memory_space<vmem>>, vector<8x1xf32>
    %18 = vector.broadcast %17 : vector<8x1xf32> to vector<8x128xf32>
    %19 = arith.addf %16, %18 : vector<8x128xf32>
    %cst_17 = arith.constant 0.000000e+00 : f32
    %20 = vector.broadcast %cst_17 : f32 to vector<8x128xf32>
    %21 = arith.maximumf %19, %20 : vector<8x128xf32>
    %c0_18 = arith.constant 0 : index
    %c0_19 = arith.constant 0 : index
    %22 = vector.load %arg8[%c0_18, %c0_19] : memref<1x8xf32, #tpu.memory_space<vmem>>, vector<1x8xf32>
    %cst_20 = arith.constant dense<0.000000e+00> : vector<1x128xf32>
    %23 = tpu.matmul %22, %21, %cst_20 {dimension_numbers = #tpu.dot_dimension_numbers<[1], [0], [0], [1], [0, 0, 1, 1], [], []>} : vector<1x8xf32>, vector<8x128xf32>, vector<1x128xf32> -> vector<1x128xf32>
    %c0_21 = arith.constant 0 : index
    %c0_22 = arith.constant 0 : index
    %24 = vector.load %arg9[%c0_21, %c0_22] : memref<1x1xf32, #tpu.memory_space<vmem>>, vector<1x1xf32>
    %25 = vector.broadcast %24 : vector<1x1xf32> to vector<1x128xf32>
    %26 = arith.addf %23, %25 : vector<1x128xf32>
    %cst_23 = arith.constant 5.000000e-01 : f32
    %27 = vector.broadcast %cst_23 : f32 to vector<1x128xf32>
    %28 = arith.mulf %27, %26 : vector<1x128xf32>
    %29 = math.tanh %28 : vector<1x128xf32>
    %cst_24 = arith.constant 1.000000e+00 : f32
    %30 = vector.broadcast %cst_24 : f32 to vector<1x128xf32>
    %31 = arith.addf %29, %30 : vector<1x128xf32>
    %cst_25 = arith.constant 5.000000e-01 : f32
    %32 = vector.broadcast %cst_25 : f32 to vector<1x128xf32>
    %33 = arith.mulf %32, %31 : vector<1x128xf32>
    %c0_26 = arith.constant 0 : index
    %c0_27 = arith.constant 0 : index
    %34 = vector.load %arg10[%c0_26, %c0_27] : memref<1x128xf32, #tpu.memory_space<vmem>>, vector<1x128xf32>
    tpu.vector_store %arg10[%c0_26, %c0_27], %33 {strides = array<i32>} : memref<1x128xf32, #tpu.memory_space<vmem>>, vector<1x128xf32>,
    return
  }
  func.func @transform_0(%arg0: i32) -> (i32, i32) {
    %c0_i32 = arith.constant 0 : i32
    %c0_i32_0 = arith.constant 0 : i32
    return %c0_i32, %arg0 : i32, i32
  }
  func.func @transform_1(%arg0: i32) -> (i32, i32) {
    %c0_i32 = arith.constant 0 : i32
    %c0_i32_0 = arith.constant 0 : i32
    %c0_i32_1 = arith.constant 0 : i32
    return %c0_i32, %c0_i32_0 : i32, i32
  }
  func.func @transform_2(%arg0: i32) -> (i32, i32) {
    %c0_i32 = arith.constant 0 : i32
    %c0_i32_0 = arith.constant 0 : i32
    %c0_i32_1 = arith.constant 0 : i32
    return %c0_i32, %c0_i32_0 : i32, i32
  }
  func.func @transform_3(%arg0: i32) -> (i32, i32) {
    %c0_i32 = arith.constant 0 : i32
    %c0_i32_0 = arith.constant 0 : i32
    %c0_i32_1 = arith.constant 0 : i32
    return %c0_i32, %c0_i32_0 : i32, i32
  }
  func.func @transform_4(%arg0: i32) -> (i32, i32) {
    %c0_i32 = arith.constant 0 : i32
    %c0_i32_0 = arith.constant 0 : i32
    %c0_i32_1 = arith.constant 0 : i32
    return %c0_i32, %c0_i32_0 : i32, i32
  }
  func.func @transform_5(%arg0: i32) -> (i32, i32) {
    %c0_i32 = arith.constant 0 : i32
    %c0_i32_0 = arith.constant 0 : i32
    %c0_i32_1 = arith.constant 0 : i32
    return %c0_i32, %c0_i32_0 : i32, i32
  }
  func.func @transform_6(%arg0: i32) -> (i32, i32) {
    %c0_i32 = arith.constant 0 : i32
    %c0_i32_0 = arith.constant 0 : i32
    %c0_i32_1 = arith.constant 0 : i32
    return %c0_i32, %c0_i32_0 : i32, i32
  }
  func.func @transform_7(%arg0: i32) -> (i32, i32) {
    %c0_i32 = arith.constant 0 : i32
    %c0_i32_0 = arith.constant 0 : i32
    %c0_i32_1 = arith.constant 0 : i32
    return %c0_i32, %c0_i32_0 : i32, i32
  }
  func.func @transform_8(%arg0: i32) -> (i32, i32) {
    %c0_i32 = arith.constant 0 : i32
    %c0_i32_0 = arith.constant 0 : i32
    %c0_i32_1 = arith.constant 0 : i32
    return %c0_i32, %c0_i32_0 : i32, i32
  }
  func.func @transform_9(%arg0: i32) -> (i32, i32) {
    %c0_i32 = arith.constant 0 : i32
    %c0_i32_0 = arith.constant 0 : i32
    return %c0_i32, %arg0 : i32, i32
  }
}

</mosaic_0001>

<bundles_post_ra>
// kernel: red_neuronal_forward.1
= control target key start
LH: loop header
LB: loop body
LE: loop exit
PB: predicated region body
PF: predicated region fallthrough
CT: control target
= control target key end

     0   :  { %vm77_vm0 = vcmask 1041408   ;;  %v250_v3 = vmov 0   ;;  %vm64_vm1 = vcmask 80896   ;;  %vm128_vm2 = vcmask 261120   ;;  %s362_s0 = inlined_call_operand.vmem [shape: f32[10,128], index: 0, kind: input, shape index: {}]   ;;  %s363_s1 = inlined_call_operand.vmem [shape: f32[32,10], index: 1, kind: input, shape index: {}]   ;;  %s364_s2 = inlined_call_operand.vmem [shape: f32[32,1], index: 2, kind: input, shape index: {}]   ;;  %s365_s8 = inlined_call_operand.<no memory space> [shape: f32[1,1], index: 8, kind: input, shape index: {}]   ;;  %s366_s6 = inlined_call_operand.vmem [shape: f32[8,1], index: 6, kind: input, shape index: {}]   ;;  %s367_s4 = inlined_call_operand.vmem [shape: f32[16,1], index: 4, kind: input, shape index: {}]   ;;  %s368_s3 = inlined_call_operand.vmem [shape: f32[16,32], index: 3, kind: input, shape index: {}]   ;;  %s369_s5 = inlined_call_operand.vmem [shape: f32[8,16], index: 5, kind: input, shape index: {}]   ;;  %s370_s7 = inlined_call_operand.vmem [shape: f32[1,8], index: 7, kind: input, shape index: {}]   ;;  %s371_s9 = inlined_call_operand.vmem [shape: f32[1,128], index: 9, kind: output, shape index: {}]  }
   0x1   :  { %v35_v0 = vld [vmem:[%s362_s0 + $0x8] sm:$0x3]  ;;  %v34_v1 = vld [vmem:[%s362_s0] sm:$0xff]  ;;  %246 = vset.pattern.permute.xlu1 %v250_v3  ;;  %245 = vset.pattern.permute.xlu0 %v250_v3  ;;  %v14_v4 = vstv %s365_s8  ;;  %v39_v5 = vld [vmem:[%s363_s1 + $0x18] sm:$0xff]  ;;  %vm167_vm3 = vcmask 130048   ;;  %vm200_vm4 = vcmask 64512  }
   0x2   :  { %v36_v2 = vld [vmem:[%s363_s1] sm:$0xff]  ;;  %233 = vmatpush.msk.msra.mxu0 %vm77_vm0, %v35_v0  ;;  %242 = vmatpush.msk.msra.mxu3 %vm77_vm0, %v35_v0  ;;  %v43_v6 = vld [vmem:[%s364_s2 + $0x18] sm:$0xff]  ;;  %v41_v7 = vld [vmem:[%s364_s2 + $0x8] sm:$0xff]  ;;  %15 = vst [vmem:[#allocation2] sm:$0x1] %v14_v4 }
   0x3   :  { %61 = vperm.xlu0 %245, %v43_v6   ;;  %51 = vperm.xlu1 %246, %v41_v7   ;;  %v42_v8 = vld [vmem:[%s364_s2 + $0x10] sm:$0xff]  ;;  %v40_v9 = vld [vmem:[%s364_s2] sm:$0xff]  ;;  %v37_v10 = vld [vmem:[%s363_s1 + $0x8] sm:$0xff] }
   0x4   :  { %96 = vmatpush.msra.mxu0 %v34_v1  ;;  %243 = vmatpush.msra.mxu3 %v34_v1  ;;  %v161_v11 = vld [vmem:[%s366_s6] sm:$0xff]  ;;  %v38_v13 = vld [vmem:[%s363_s1 + $0x10] sm:$0xff]  ;;  %v117_v15 = vld [vmem:[%s367_s4 + $0x8] sm:$0xff] }
   0x5   :  { %234 = vmatmul.msk.f32.vlgmr.msra.gmra.mxu0 %vm64_vm1, %v36_v2  ;;  %237 = vmatmul.msk.f32.vlgmr.msra.gmra.mxu3 %vm64_vm1, %v39_v5  ;;  %v116_v21 = vld [vmem:[%s367_s4] sm:$0xff]  ;;  %v115_v33 = vld [vmem:[%s368_s3 + $0x8] sm:$0xff] }
   0x6   :  { %247 = vset.pattern.permute.xlu2 %v250_v3  ;;  %v114_v32 = vld [vmem:[%s368_s3] sm:$0xff] }
   0x7   :  { %125 = vperm.xlu2 %247, %v117_v15   ;;  %v160_v42 = vld [vmem:[%s369_s5] sm:$0xff] }
   0x8   :  { %v192_v47 = vld [vmem:[%s370_s7] sm:$0x1] }
   0x9   :  { %v193_v12 = vld [vmem:[#allocation2] sm:$0x1] }
   0xb   :  { %56 = vperm.xlu0 %245, %v42_v8   ;;  %46 = vperm.xlu1 %246, %v40_v9  }
   0xd   :  { %235 = vmatmul.msk.f32.gmra.mxu0 %vm64_vm1, %v37_v10 }
   0xf   :  { %120 = vperm.xlu2 %247, %v116_v21  }
  0x13   :  { %164 = vperm.xlu0 %245, %v161_v11   ;;  %196 = vperm.xlu1 %246, %v193_v12  }
  0x15   :  { %236 = vmatmul.msk.f32.gmra.mxu0 %vm64_vm1, %v38_v13 }
  0x61   :  { %v126_v34 = vpop.permute.xlu2 %125 }
  0x69   :  { %v121_v36 = vpop.permute.xlu2 %120 }
  0x75   :  { %v62_v16 = vpop.permute.xlu0 %61  ;;  %v52_v17 = vpop.permute.xlu1 %51 }
  0x7d   :  { %v57_v23 = vpop.permute.xlu0 %56  ;;  %v47_v24 = vpop.permute.xlu1 %46 }
  0x82   :  { %v98_v14 = vpop.f32.mrf.mxu0 }
  0x83   :  { %v99_v28 = vadd.f32 %v98_v14, %v47_v24 }
  0x85   :  { %v110_v31 = vmax.f32 %v99_v28, 0.0  ;;  %v165_v43 = vpop.permute.xlu0 %164  ;;  %v197_v48 = vpop.permute.xlu1 %196 }
  0x86   :  { %v199_v49 = vperm.slane %v197_v48, 0 }
  0x88   :  { %v107_v18 = vpop.f32.mrf.mxu3 }
  0x89   :  { %v108_v19 = vadd.f32 %v107_v18, %v62_v16 }
  0x8a   :  { %v101_v20 = vpop.f32.mrf.mxu0 }
  0x8b   :  { %v113_v22 = vmax.f32 %v108_v19, 0.0  ;;  %v102_v26 = vadd.f32 %v101_v20, %v52_v17 }
  0x8d   :  { %147 = vmatpush.msra.mxu1 %v113_v22  ;;  %v111_v30 = vmax.f32 %v102_v26, 0.0 }
  0x92   :  { %v104_v25 = vpop.f32.mrf.mxu0 }
  0x93   :  { %v105_v27 = vadd.f32 %v104_v25, %v57_v23 }
  0x95   :  { %v112_v29 = vmax.f32 %v105_v27, 0.0 }
  0x97   :  { %148 = vmatpush.msra.mxu1 %v112_v29 }
  0x99   :  { %149 = vmatpush.msra.mxu1 %v111_v30 }
  0x9b   :  { %150 = vmatpush.msra.mxu1 %v110_v31 }
  0x9c   :  { %238 = vmatmul.msk.f32.vlgmr.msra.gmra.mxu1 %vm128_vm2, %v114_v32 }
  0xa4   :  { %239 = vmatmul.msk.f32.gmra.mxu1 %vm128_vm2, %v115_v33 }
 0x119   :  { %v152_v35 = vpop.f32.mrf.mxu1 }
 0x11a   :  { %v153_v38 = vadd.f32 %v152_v35, %v121_v36 }
 0x11c   :  { %v158_v41 = vmax.f32 %v153_v38, 0.0 }
 0x121   :  { %v155_v37 = vpop.f32.mrf.mxu1 }
 0x122   :  { %v156_v39 = vadd.f32 %v155_v37, %v126_v34 }
 0x124   :  { %v159_v40 = vmax.f32 %v156_v39, 0.0 }
 0x126   :  { %185 = vmatpush.msra.mxu2 %v159_v40 }
 0x128   :  { %186 = vmatpush.msra.mxu2 %v158_v41 }
 0x129   :  { %240 = vmatmul.msk.f32.vlgmr.msra.gmra.mxu2 %vm167_vm3, %v160_v42 }
 0x1ac   :  { %v188_v44 = vpop.f32.mrf.mxu2 }
 0x1ad   :  { %v189_v45 = vadd.f32 %v188_v44, %v165_v43 }
 0x1af   :  { %v191_v46 = vmax.f32 %v189_v45, 0.0 }
 0x1b1   :  { %219 = vmatpush.msrb.mxu3 %v191_v46 }
 0x1b2   :  { %241 = vmatmul.msk.f32.vlgmr.msrb.gmra.mxu3 %vm200_vm4, %v192_v47 }
 0x235   :  { %v221_v50 = vpop.f32.mrf.mxu3 }
 0x236   :  { %v222_v51 = vadd.f32 %v221_v50, %v199_v49 }
 0x238   :  { %v224_v52 = vmul.f32 0.5, %v222_v51 }
 0x23a   :  { %248 = vtanh.f32 %v224_v52 }
 0x240   :  { %v249_v53 = vpop.eup %248 }
 0x241   :  { %v226_v54 = vadd.f32 1.0, %v249_v53 }
 0x243   :  { %v227_v55 = vmul.f32 0.5, %v226_v54 }
 0x245   :  { %228 = vst [vmem:[%s371_s9] sm:$0x1] %v227_v55 }

</bundles_post_ra>
